<compile_context>
chip_gen: v7x
topology: tpu7x:2x2x1
jax: 0.10.0
libtpu: 0.0.40
codegen_flags: <defaults>
</compile_context>

<pallas_src>
import jax
import jax.numpy as jnp
from jax.experimental import pallas as pl
from jax.experimental.pallas import tpu as pltpu


def _round_up(x, m):
    return ((x + m - 1) // m) * m


def lstm_seq_kernel(x_ref, h0_ref, c0_ref, w_ref, b_ref,
                    hs_ref, c_out_ref, h_scr, c_scr):
    """One grid step = one LSTM timestep.  State (h, c) stays in VMEM scratch."""
    t = pl.program_id(0)
    H = h_scr.shape[-1]
    Din = w_ref.shape[0] - H

    @pl.when(t == 0)
    def _():
        h_scr[...] = h0_ref[...]
        c_scr[...] = c0_ref[...]

    x = x_ref[0]                      # (B_pad, Din)
    h = h_scr[...]                    # (B_pad, H)

    # gates = [x, h] @ [W_ih; W_hh] + b   (weights resident in VMEM; the two dots
    # read sublane-aligned slices of the single combined weight buffer).
    gates = (
        jnp.dot(x, w_ref[:Din, :], preferred_element_type=jnp.float32)
        + jnp.dot(h, w_ref[Din:, :], preferred_element_type=jnp.float32)
        + b_ref[...]
    )                                 # (B_pad, 4H), gate order [i, f, o, g]

    sig = jax.nn.sigmoid(gates[:, :3 * H])   # one contiguous sigmoid slab
    i_g = sig[:, 0 * H:1 * H]
    f_g = sig[:, 1 * H:2 * H]
    o_g = sig[:, 2 * H:3 * H]
    g_g = jnp.tanh(gates[:, 3 * H:4 * H])    # one contiguous tanh slab

    c_new = f_g * c_scr[...] + i_g * g_g
    h_new = o_g * jnp.tanh(c_new)

    h_scr[...] = h_new
    c_scr[...] = c_new

    hs_ref[0] = h_new.astype(hs_ref.dtype)
    # Constant-index output block stays resident; written back to HBM once at end.
    c_out_ref[...] = c_new.astype(c_out_ref.dtype)


def _lstm_sequence_pallas(xs, h0, c0, W, b):
    """xs:(T,B_pad,Din) h0,c0:(B_pad,H) W:(Din+H,4H) b:(1,4H) -> (hs, c_last)."""
    T, B_pad, Din = xs.shape
    H = h0.shape[-1]
    KH = Din + H
    return pl.pallas_call(
        lstm_seq_kernel,
        out_shape=(
            jax.ShapeDtypeStruct((T, B_pad, H), jnp.float32),
            jax.ShapeDtypeStruct((B_pad, H), jnp.float32),
        ),
        grid_spec=pltpu.PrefetchScalarGridSpec(
            num_scalar_prefetch=0,
            grid=(T,),
            in_specs=[
                pl.BlockSpec((1, B_pad, Din), lambda t: (t, 0, 0)),  # stream x[t]
                pl.BlockSpec((B_pad, H), lambda t: (0, 0)),          # h0 (read @t=0)
                pl.BlockSpec((B_pad, H), lambda t: (0, 0)),          # c0 (read @t=0)
                pl.BlockSpec((KH, 4 * H), lambda t: (0, 0)),         # weights: resident
                pl.BlockSpec((1, 4 * H), lambda t: (0, 0)),          # bias: resident
            ],
            out_specs=(
                pl.BlockSpec((1, B_pad, H), lambda t: (t, 0, 0)),    # h per step
                pl.BlockSpec((B_pad, H), lambda t: (0, 0)),          # final c
            ),
            scratch_shapes=[
                pltpu.VMEM((B_pad, H), jnp.float32),   # h carried across steps
                pltpu.VMEM((B_pad, H), jnp.float32),   # c carried across steps
            ],
        ),
        compiler_params=pltpu.CompilerParams(
            dimension_semantics=("arbitrary",)),       # time axis carries state
    )(xs, h0, c0, W, b)


@jax.jit
def _stateful_step(x, h_pad, c_pad, W, b):
    """One stateful call: pad batch, run a T=1 fused kernel, return (h_pad, c_pad)."""
    B = x.shape[0]
    B_pad = h_pad.shape[0]
    x_pad = jnp.pad(x.astype(jnp.float32), ((0, B_pad - B), (0, 0)))[None]  # (1,B_pad,Din)
    hs, c_last = _lstm_sequence_pallas(x_pad, h_pad, c_pad, W, b)
    return hs[0], c_last


@jax.jit
def _sequence_run(xs, h_pad, c_pad, W, b):
    """All T steps in ONE pallas_call."""
    T, B, Din = xs.shape
    B_pad = h_pad.shape[0]
    xs_pad = jnp.pad(xs.astype(jnp.float32), ((0, 0), (0, B_pad - B), (0, 0)))
    return _lstm_sequence_pallas(xs_pad, h_pad, c_pad, W, b)


class StatefulLSTM:
    """Mirror of the PyTorch StatefulLSTM: keeps (h, c) across calls, returns h."""

    def __init__(self, in_size, out_size, key):
        self.in_size = in_size
        self.out_size = out_size
        k1, k2, k3, k4 = jax.random.split(key, 4)
        bound = 1.0 / jnp.sqrt(out_size)
        # Same parameterization/shapes as nn.LSTMCell (gate order i, f, g, o).
        self.w_ih = jax.random.uniform(k1, (4 * out_size, in_size),
                                       minval=-bound, maxval=bound, dtype=jnp.float32)
        self.w_hh = jax.random.uniform(k2, (4 * out_size, out_size),
                                       minval=-bound, maxval=bound, dtype=jnp.float32)
        self.b_ih = jax.random.uniform(k3, (4 * out_size,),
                                       minval=-bound, maxval=bound, dtype=jnp.float32)
        self.b_hh = jax.random.uniform(k4, (4 * out_size,),
                                       minval=-bound, maxval=bound, dtype=jnp.float32)

        # ---- one-time weight prep (hoisted out of the forward path) ----
        # Combined weight [W_ih ; W_hh], gate rows reordered [i,f,g,o] -> [i,f,o,g],
        # transposed to (Din+H, 4H) so the kernel does plain row-major dots.
        def reorder_gates(m):                       # m: (4H, X)
            i, f, g, o = jnp.split(m, 4, axis=0)
            return jnp.concatenate([i, f, o, g], axis=0)

        w_cat = jnp.concatenate([self.w_ih, self.w_hh], axis=1)   # (4H, Din+H)
        self._W = jnp.asarray(reorder_gates(w_cat).T, jnp.float32)  # (Din+H, 4H)
        b4 = (self.b_ih + self.b_hh).reshape(4, out_size)
        self._b = jnp.concatenate([b4[0], b4[1], b4[3], b4[2]]
                                  ).reshape(1, 4 * out_size).astype(jnp.float32)

        self.h = None   # padded (B_pad, H) state
        self.c = None

    def reset_state(self):
        self.h = None
        self.c = None

    def _ensure_state(self, batch_size):
        b_pad = _round_up(batch_size, 8)            # sublane-dense batch
        if self.h is None:
            self.h = jnp.zeros((b_pad, self.out_size), jnp.float32)
            self.c = jnp.zeros((b_pad, self.out_size), jnp.float32)
        return b_pad

    def __call__(self, x):
        """One step, state carried across calls (PyTorch module semantics)."""
        B = x.shape[0]
        self._ensure_state(B)
        self.h, self.c = _stateful_step(x, self.h, self.c, self._W, self._b)
        return self.h[:B]

    def forward_sequence(self, xs):
        """Process (T, B, Din) in ONE fused pallas_call; updates state to step T-1."""
        T, B, _ = xs.shape
        self._ensure_state(B)
        hs, c_last = _sequence_run(xs, self.h, self.c, self._W, self._b)
        self.h = hs[-1]
        self.c = c_last
        return hs[:, :B]


def _reference_step(x, h, c, w_ih, w_hh, b_ih, b_hh):
    gates = x @ w_ih.T + b_ih + h @ w_hh.T + b_hh
    H = h.shape[-1]
    i = jax.nn.sigmoid(gates[:, 0 * H:1 * H])
    f = jax.nn.sigmoid(gates[:, 1 * H:2 * H])
    g = jnp.tanh(gates[:, 2 * H:3 * H])
    o = jax.nn.sigmoid(gates[:, 3 * H:4 * H])
    c_new = f * c + i * g
    h_new = o * jnp.tanh(c_new)
    return h_new, c_new


if __name__ == "__main__":
    key = jax.random.PRNGKey(0)
    k_param, k_x = jax.random.split(key)

    batch, in_size, hidden, T = 2, 16, 32, 4
    model = StatefulLSTM(in_size, hidden, k_param)
    xs = jax.random.normal(k_x, (T, batch, in_size), dtype=jnp.float32)

    # (a) Stateful per-call usage — mirrors the PyTorch module exactly.
    per_call = []
    for t in range(T):
        per_call.append(model(xs[t]))
    per_call = jax.block_until_ready(jnp.stack(per_call))        # (T, B, H)

    # (b) Fused path — all T timesteps inside ONE pallas_call.
    model.reset_state()
    fused = jax.block_until_ready(model.forward_sequence(xs))    # (T, B, H)

    # Pure-JAX reference of the same T steps.
    h = jnp.zeros((batch, hidden), jnp.float32)
    c = jnp.zeros((batch, hidden), jnp.float32)
    ref = []
    for t in range(T):
        h, c = _reference_step(xs[t], h, c,
                               model.w_ih, model.w_hh, model.b_ih, model.b_hh)
        ref.append(h)
    ref = jnp.stack(ref)

    assert jnp.allclose(per_call, ref, atol=1e-5, rtol=1e-5)
    assert jnp.allclose(fused, ref, atol=1e-5, rtol=1e-5)

    print("KERNEL_OK")
</pallas_src>

<mosaic_0001>
module attributes {stable_mosaic.version = 11 : i64} {
  func.func @lstm_seq_kernel(%arg0: i32, %arg1: memref<1x8x16xf32, #tpu.memory_space<vmem>>, %arg2: memref<8x32xf32, #tpu.memory_space<vmem>>, %arg3: memref<8x32xf32, #tpu.memory_space<vmem>>, %arg4: memref<48x128xf32, #tpu.memory_space<vmem>>, %arg5: memref<1x128xf32, #tpu.memory_space<vmem>>, %arg6: memref<1x8x32xf32, #tpu.memory_space<vmem>>, %arg7: memref<8x32xf32, #tpu.memory_space<vmem>>, %arg8: memref<8x32xf32, #tpu.memory_space<vmem>>, %arg9: memref<8x32xf32, #tpu.memory_space<vmem>>) attributes {dimension_semantics = [#tpu.dimension_semantics<arbitrary>], iteration_bounds = array<i64: 1>, scalar_prefetch = 0 : i64, scratch_operands = 2 : i64, tpu.core_type = #tpu.core_type<tc>, window_params = [{transform_indices = @transform_0, window_bounds = array<i64: 1, 8, 16>}, {pipeline_mode = #tpu.pipeline_mode<synchronous>, transform_indices = @transform_1, window_bounds = array<i64: 8, 32>}, {pipeline_mode = #tpu.pipeline_mode<synchronous>, transform_indices = @transform_2, window_bounds = array<i64: 8, 32>}, {pipeline_mode = #tpu.pipeline_mode<synchronous>, transform_indices = @transform_3, window_bounds = array<i64: 48, 128>}, {pipeline_mode = #tpu.pipeline_mode<synchronous>, transform_indices = @transform_4, window_bounds = array<i64: 1, 128>}, {transform_indices = @transform_5, window_bounds = array<i64: 1, 8, 32>}, {pipeline_mode = #tpu.pipeline_mode<synchronous>, transform_indices = @transform_6, window_bounds = array<i64: 8, 32>}]} {
    %c0_i32 = arith.constant 0 : i32
    %0 = arith.cmpi eq, %arg0, %c0_i32 : i32
    %1 = arith.extui %0 : i1 to i32
    %c0_i32_0 = arith.constant 0 : i32
    %2 = arith.cmpi ne, %1, %c0_i32_0 : i32
    scf.if %2 {
      %c0_23 = arith.constant 0 : index
      %c0_24 = arith.constant 0 : index
      %37 = vector.load %arg2[%c0_23, %c0_24] : memref<8x32xf32, #tpu.memory_space<vmem>>, vector<8x32xf32>
      %c0_25 = arith.constant 0 : index
      %c0_26 = arith.constant 0 : index
      %38 = vector.load %arg8[%c0_25, %c0_26] : memref<8x32xf32, #tpu.memory_space<vmem>>, vector<8x32xf32>
      tpu.vector_store %arg8[%c0_25, %c0_26], %37 {strides = array<i32>} : memref<8x32xf32, #tpu.memory_space<vmem>>, vector<8x32xf32>,
      %c0_27 = arith.constant 0 : index
      %c0_28 = arith.constant 0 : index
      %39 = vector.load %arg3[%c0_27, %c0_28] : memref<8x32xf32, #tpu.memory_space<vmem>>, vector<8x32xf32>
      %c0_29 = arith.constant 0 : index
      %c0_30 = arith.constant 0 : index
      %40 = vector.load %arg9[%c0_29, %c0_30] : memref<8x32xf32, #tpu.memory_space<vmem>>, vector<8x32xf32>
      tpu.vector_store %arg9[%c0_29, %c0_30], %39 {strides = array<i32>} : memref<8x32xf32, #tpu.memory_space<vmem>>, vector<8x32xf32>,
    } else {
    }
    %c0 = arith.constant 0 : index
    %c0_1 = arith.constant 0 : index
    %c0_2 = arith.constant 0 : index
    %3 = vector.load %arg1[%c0, %c0_1, %c0_2] : memref<1x8x16xf32, #tpu.memory_space<vmem>>, vector<1x8x16xf32>
    %4 = vector.shape_cast %3 : vector<1x8x16xf32> to vector<8x16xf32>
    %c0_3 = arith.constant 0 : index
    %c0_4 = arith.constant 0 : index
    %5 = vector.load %arg8[%c0_3, %c0_4] : memref<8x32xf32, #tpu.memory_space<vmem>>, vector<8x32xf32>
    %c0_5 = arith.constant 0 : index
    %c0_6 = arith.constant 0 : index
    %6 = vector.load %arg4[%c0_5, %c0_6] : memref<48x128xf32, #tpu.memory_space<vmem>>, vector<16x128xf32>
    %cst = arith.constant dense<0.000000e+00> : vector<8x128xf32>
    %7 = tpu.matmul %4, %6, %cst {dimension_numbers = #tpu.dot_dimension_numbers<[1], [0], [0], [1], [0, 0, 1, 1], [], []>} : vector<8x16xf32>, vector<16x128xf32>, vector<8x128xf32> -> vector<8x128xf32>
    %c16 = arith.constant 16 : index
    %c0_7 = arith.constant 0 : index
    %8 = vector.load %arg4[%c16, %c0_7] : memref<48x128xf32, #tpu.memory_space<vmem>>, vector<32x128xf32>
    %cst_8 = arith.constant dense<0.000000e+00> : vector<8x128xf32>
    %9 = tpu.matmul %5, %8, %cst_8 {dimension_numbers = #tpu.dot_dimension_numbers<[1], [0], [0], [1], [0, 0, 1, 1], [], []>} : vector<8x32xf32>, vector<32x128xf32>, vector<8x128xf32> -> vector<8x128xf32>
    %10 = arith.addf %7, %9 : vector<8x128xf32>
    %c0_9 = arith.constant 0 : index
    %c0_10 = arith.constant 0 : index
    %11 = vector.load %arg5[%c0_9, %c0_10] : memref<1x128xf32, #tpu.memory_space<vmem>>, vector<1x128xf32>
    %12 = vector.broadcast %11 : vector<1x128xf32> to vector<8x128xf32>
    %13 = arith.addf %10, %12 : vector<8x128xf32>
    %14 = vector.extract_strided_slice %13 {offsets = [0, 0], sizes = [8, 96], strides = [1, 1]} : vector<8x128xf32> to vector<8x96xf32>
    %15 = arith.negf %14 : vector<8x96xf32>
    %16 = math.exp %15 : vector<8x96xf32>
    %cst_11 = arith.constant 1.000000e+00 : f32
    %17 = vector.broadcast %cst_11 : f32 to vector<8x96xf32>
    %18 = arith.addf %17, %16 : vector<8x96xf32>
    %19 = arith.divf %17, %18 : vector<8x96xf32>
    %20 = vector.extract_strided_slice %19 {offsets = [0, 0], sizes = [8, 32], strides = [1, 1]} : vector<8x96xf32> to vector<8x32xf32>
    %21 = vector.extract_strided_slice %19 {offsets = [0, 32], sizes = [8, 32], strides = [1, 1]} : vector<8x96xf32> to vector<8x32xf32>
    %22 = vector.extract_strided_slice %19 {offsets = [0, 64], sizes = [8, 32], strides = [1, 1]} : vector<8x96xf32> to vector<8x32xf32>
    %23 = vector.extract_strided_slice %13 {offsets = [0, 96], sizes = [8, 32], strides = [1, 1]} : vector<8x128xf32> to vector<8x32xf32>
    %24 = math.tanh %23 : vector<8x32xf32>
    %c0_12 = arith.constant 0 : index
    %c0_13 = arith.constant 0 : index
    %25 = vector.load %arg9[%c0_12, %c0_13] : memref<8x32xf32, #tpu.memory_space<vmem>>, vector<8x32xf32>
    %26 = arith.mulf %21, %25 : vector<8x32xf32>
    %27 = arith.mulf %20, %24 : vector<8x32xf32>
    %28 = arith.addf %26, %27 : vector<8x32xf32>
    %29 = math.tanh %28 : vector<8x32xf32>
    %30 = arith.mulf %22, %29 : vector<8x32xf32>
    %c0_14 = arith.constant 0 : index
    %c0_15 = arith.constant 0 : index
    %31 = vector.load %arg8[%c0_14, %c0_15] : memref<8x32xf32, #tpu.memory_space<vmem>>, vector<8x32xf32>
    tpu.vector_store %arg8[%c0_14, %c0_15], %30 {strides = array<i32>} : memref<8x32xf32, #tpu.memory_space<vmem>>, vector<8x32xf32>,
    %c0_16 = arith.constant 0 : index
    %c0_17 = arith.constant 0 : index
    %32 = vector.load %arg9[%c0_16, %c0_17] : memref<8x32xf32, #tpu.memory_space<vmem>>, vector<8x32xf32>
    tpu.vector_store %arg9[%c0_16, %c0_17], %28 {strides = array<i32>} : memref<8x32xf32, #tpu.memory_space<vmem>>, vector<8x32xf32>,
    %c0_18 = arith.constant 0 : index
    %c0_19 = arith.constant 0 : index
    %c0_20 = arith.constant 0 : index
    %33 = vector.load %arg6[%c0_18, %c0_19, %c0_20] : memref<1x8x32xf32, #tpu.memory_space<vmem>>, vector<1x8x32xf32>
    %34 = vector.shape_cast %33 : vector<1x8x32xf32> to vector<8x32xf32>
    %35 = vector.shape_cast %30 : vector<8x32xf32> to vector<1x8x32xf32>
    tpu.vector_store %arg6[%c0_18, %c0_19, %c0_20], %35 {strides = array<i32>} : memref<1x8x32xf32, #tpu.memory_space<vmem>>, vector<1x8x32xf32>,
    %c0_21 = arith.constant 0 : index
    %c0_22 = arith.constant 0 : index
    %36 = vector.load %arg7[%c0_21, %c0_22] : memref<8x32xf32, #tpu.memory_space<vmem>>, vector<8x32xf32>
    tpu.vector_store %arg7[%c0_21, %c0_22], %28 {strides = array<i32>} : memref<8x32xf32, #tpu.memory_space<vmem>>, vector<8x32xf32>,
    return
  }
  func.func @transform_0(%arg0: i32) -> (i32, i32, i32) {
    %c0_i32 = arith.constant 0 : i32
    %c0_i32_0 = arith.constant 0 : i32
    %c0_i32_1 = arith.constant 0 : i32
    return %arg0, %c0_i32, %c0_i32_0 : i32, i32, i32
  }
  func.func @transform_1(%arg0: i32) -> (i32, i32) {
    %c0_i32 = arith.constant 0 : i32
    %c0_i32_0 = arith.constant 0 : i32
    %c0_i32_1 = arith.constant 0 : i32
    return %c0_i32, %c0_i32_0 : i32, i32
  }
  func.func @transform_2(%arg0: i32) -> (i32, i32) {
    %c0_i32 = arith.constant 0 : i32
    %c0_i32_0 = arith.constant 0 : i32
    %c0_i32_1 = arith.constant 0 : i32
    return %c0_i32, %c0_i32_0 : i32, i32
  }
  func.func @transform_3(%arg0: i32) -> (i32, i32) {
    %c0_i32 = arith.constant 0 : i32
    %c0_i32_0 = arith.constant 0 : i32
    %c0_i32_1 = arith.constant 0 : i32
    return %c0_i32, %c0_i32_0 : i32, i32
  }
  func.func @transform_4(%arg0: i32) -> (i32, i32) {
    %c0_i32 = arith.constant 0 : i32
    %c0_i32_0 = arith.constant 0 : i32
    %c0_i32_1 = arith.constant 0 : i32
    return %c0_i32, %c0_i32_0 : i32, i32
  }
  func.func @transform_5(%arg0: i32) -> (i32, i32, i32) {
    %c0_i32 = arith.constant 0 : i32
    %c0_i32_0 = arith.constant 0 : i32
    %c0_i32_1 = arith.constant 0 : i32
    return %arg0, %c0_i32, %c0_i32_0 : i32, i32, i32
  }
  func.func @transform_6(%arg0: i32) -> (i32, i32) {
    %c0_i32 = arith.constant 0 : i32
    %c0_i32_0 = arith.constant 0 : i32
    %c0_i32_1 = arith.constant 0 : i32
    return %c0_i32, %c0_i32_0 : i32, i32
  }
}

</mosaic_0001>

<bundles_post_ra>
// kernel: _stateful_step.1
= control target key start
LH: loop header
LB: loop body
LE: loop exit
PB: predicated region body
PF: predicated region fallthrough
CT: control target
= control target key end

     0   :  { %12 = vsyncpa [#allocation5], 0  ;;  %s512_s0 = inlined_call_operand.vmem [shape: f32[1,8,16], index: 0, kind: input, shape index: {}]   ;;  %s513_s1 = inlined_call_operand.vmem [shape: f32[8,32], index: 1, kind: input, shape index: {}]   ;;  %s514_s2 = inlined_call_operand.vmem [shape: f32[8,32], index: 2, kind: input, shape index: {}]   ;;  %s515_s3 = inlined_call_operand.hbm [shape: f32[48,128], index: 3, kind: input, shape index: {}]   ;;  %s516_s4 = inlined_call_operand.vmem [shape: f32[1,128], index: 4, kind: input, shape index: {}]   ;;  %s517_s5 = inlined_call_operand.hbm [shape: f32[1,8,32], index: 5, kind: output, shape index: {0}]   ;;  %s518_s6 = inlined_call_operand.hbm [shape: f32[8,32], index: 6, kind: output, shape index: {1}]  }
   0x1   :  { %13 = vsyncpa [#allocation6], 0 }
   0x2   :  { %14 = vsyncpa [#allocation9], 0  ;;  %s411_s21 = smov [#allocation4]   ;;  %s339_s25 = scalar_lea.hbm %s515_s3, 768 }
   0x3   :  { %s26_s22 = sshll.u32 %s411_s21, 4  ;;  %p340_p0 = scmp.ne.s32.totalorder %s515_s3, %s339_s25  ;;  %s27_s22 = int_to_ptr.vmem [resolvable:$true] %s26_s22 }
   0x4   :  { %p343_p1 = scmp.lt.u32.totalorder %s339_s25, %s515_s3 }
   0x6   :  { %p345_p2 = pnand %p343_p1, %p340_p0 }
   0x8   :  { %348 = shalt.err (!%p345_p2)
}
   0x9   :  { %s349_s30 = scalar_lea.vmem %s27_s22, 768  ;;  %p354_p4 = scmp.lt.s32.totalorder %s27_s22, %s27_s22 }
   0xa   :  { %p350_p3 = scmp.ne.s32.totalorder %s27_s22, %s349_s30  ;;  %p355_p5 = scmp.lt.s32.totalorder %s349_s30, %s349_s30 }
   0xc   :  { %p356_p6 = por %p355_p5, %p354_p4 }
   0xe   :  { %p357_p7 = pnand %p356_p6, %p350_p3 }
  0x10   :  { %360 = shalt.err (!%p357_p7)
}
  0x11   :  { %s412_s7 = smov 128   ;;  %s413_s8 = smov 8  }
  0x12   :  { %32 = dma.hbm_to_vmem [thread:$0]  %s515_s3, 768, %s27_s22, [#allocation5], %s412_s7, %s412_s7, %s413_s8  }
  0x13   :  { %405 = dma.done.wait [#allocation5], 768  }
  0x14   :  { %406 = vsyncadd [#allocation5], 4294966528  ;;  %v414_v0 = vmov 0.0|0.0   ;;  %vm415_vm0 = vmmov 0   ;;  %v416_v1 = vmov 0.0   ;;  %v51_v2 = vld [vmem:[#allocation4 + $0x10] sm:$0xff] }
  0x15   :  { %311 = vmatprep.subr.bf16.mxu0 %v414_v0  ;;  %317 = vmatprep.subr.bf16.mxu1 %v414_v0  ;;  %v52_v3 = vld [vmem:[#allocation4 + $0x18] sm:$0xff]  ;;  %v49_v4 = vld [vmem:[#allocation4] sm:$0xff]  ;;  %vm43_vm1 = vcmask 261120   ;;  %v50_v6 = vld [vmem:[#allocation4 + $0x8] sm:$0xff]  ;;  %vm129_vm2 = vcmask 130048   ;;  %s417_s16 = smov 32  }
  0x16   :  { %308 = vmatprep.mubr.msk.f32.mxu1 %vm415_vm0, %v416_v1  ;;  %301 = vmatprep.mubr.msk.f32.mxu0 %vm415_vm0, %v416_v1  ;;  %v312_v5 = vpack.c.bf16 %v52_v3, %v51_v2  ;;  %v53_v7 = vld [vmem:[#allocation4 + $0x20] sm:$0xff]  ;;  %v54_v8 = vld [vmem:[#allocation4 + $0x28] sm:$0xff]  ;;  %v318_v9 = vpack.c.bf16 %v50_v6, %v49_v4  ;;  %s420_s18 = smov 64  }
  0x17   :  { %v42_v10 = vld [vmem:[%s513_s1] sm:$0xff]  ;;  %v315_v12 = vpack.c.bf16 %v54_v8, %v53_v7 }
  0x18   :  { %v45_v11 = vld [vmem:[%s514_s2] sm:$0xff]  ;;  %313 = vmatpush3.bf16.msra.mxu0 %v312_v5  ;;  %44 = vst.msk [vmem:[#allocation2] sm:$0xff] %vm43_vm1, %v42_v10  ;;  %319 = vmatpush3.bf16.msra.mxu1 %v318_v9 }
  0x19   :  { %46 = vst.msk [vmem:[#allocation3] sm:$0xff] %vm43_vm1, %v45_v11  ;;  %314 = vmatprep.subr.bf16.mxu0 %v414_v0  ;;  %v47_v13 = vld [vmem:[%s512_s0] sm:$0xff]  ;;  %s418_s0 = smov 96  }
  0x1a   :  { %v283_v18 = vld [vmem:[%s516_s4] ss:$0 sm:$0xff]  ;;  %s419_s4 = smov [#allocation8]  }
  0x1b   :  { %309 = vmatmul.mubr.msk.f32.vlgmr.msra.gmra.mrb[0].mxu1 %vm129_vm2, %v47_v13  ;;  %s268_s17 = sshll.u32 %s419_s4, 4  ;;  %s269_s17 = int_to_ptr.vmem [resolvable:$true] %s268_s17 }
  0x1c   :  { %316 = vmatpush3.bf16.msra.mxu0 %v315_v12  ;;  %s361_s19 = scalar_lea.vmem %s269_s17, 128  ;;  %p366_p9 = scmp.lt.s32.totalorder %s269_s17, %s269_s17 }
  0x1d   :  { %p362_p8 = scmp.ne.s32.totalorder %s269_s17, %s361_s19  ;;  %p367_p10 = scmp.lt.s32.totalorder %s361_s19, %s361_s19 }
  0x1f   :  { %v48_v14 = vld [vmem:[#allocation2] sm:$0xff]  ;;  %p368_p11 = por %p367_p10, %p366_p9 }
  0x20   :  { %302 = vmatmul.mubr.msk.f32.vlgmr.msra.gmra.mrb[0].mxu0 %vm43_vm1, %v48_v14  ;;  %v218_v23 = vld [vmem:[#allocation3] sm:$0xff] }
  0x21   :  { %p369_p12 = pnand %p368_p11, %p362_p8 }
  0xee   :  { %v199_v15 = vpop.f32.mrb[0].mxu1 }
  0xef   :  { %v310_v16 = vpop.f32.mrb[1].mxu1 }
  0xf3   :  { %v125_v17 = vpop.f32.mrb[0].mxu0 }
  0xf4   :  { %v200_v19 = vadd.f32 %v199_v15, %v125_v17  ;;  %v303_v20 = vpop.f32.mrb[1].mxu0 }
  0xf6   :  { %v210_v21 = vadd.f32 %v283_v18, %v200_v19 }
  0xf8   :  { %331 = vtanh.f32 %v210_v21  ;;  %v284_v24 = vmul.f32 -1.442695, %v210_v21 }
  0xfa   :  { %333 = vpow2.f32 %v284_v24 }
 0x102   :  { %v332_v22 = vpop.eup %331 }
 0x103   :  { %225 = vrot.lane.b32.xlu0 %v332_v22, %s417_s16 }
 0x104   :  { %v334_v25 = vpop.eup %333 }
 0x105   :  { %v214_v26 = vadd.f32 1.0, %v334_v25 }
 0x107   :  { %220 = vrot.lane.b32.xlu0 %v218_v23, %s417_s16  ;;  %335 = vrcp.f32 %v214_v26 }
 0x111   :  { %v336_v27 = vpop.eup %335 }
 0x175   :  { %v226_v28 = vpop.permute.xlu0 %225 }
 0x176   :  { %v228_v29 = vmul.f32 %v336_v27, %v226_v28 }
 0x178   :  { %230 = vrot.lane.b32.xlu1 %v228_v29, %s417_s16 }
 0x179   :  { %v221_v30 = vpop.permute.xlu0 %220 }
 0x17a   :  { %v223_v31 = vmul.f32 %v336_v27, %v221_v30 }
 0x1ea   :  { %v231_v32 = vpop.permute.xlu1 %230 }
 0x1eb   :  { %v233_v33 = vadd.f32 %v231_v32, %v223_v31 }
 0x1ed   :  { %337 = vtanh.f32 %v233_v33 }
 0x1f7   :  { %v338_v34 = vpop.eup %337 }
 0x1f8   :  { %236 = vrot.lane.b32.xlu1 %v338_v34, %s417_s16 }
 0x1fc   :  { %246 = vrot.lane.b32.xlu1 %v233_v33, %s418_s0 }
 0x26a   :  { %v237_v35 = vpop.permute.xlu1 %236 }
 0x26b   :  { %v239_v36 = vmul.f32 %v336_v27, %v237_v35 }
 0x26d   :  { %241 = vrot.lane.b32.xlu0 %v239_v36, %s420_s18 }
 0x26e   :  { %v247_v37 = vpop.permute.xlu1 %246 }
 0x26f   :  { %249 = vst.msk [vmem:[#allocation3] sm:$0xff] %vm43_vm1, %v247_v37  ;;  %251 = vst.msk [vmem:[#allocation8] sm:$0xff] %vm43_vm1, %v247_v37 }
 0x270   :  { %372 = shalt.err (!%p369_p12)
}
 0x271   :  { %s373_s22 = scalar_lea.hbm %s518_s6, 128 }
 0x272   :  { %p374_p13 = scmp.ne.s32.totalorder %s518_s6, %s373_s22  ;;  %p377_p0 = scmp.lt.u32.totalorder %s373_s22, %s518_s6 }
 0x274   :  { %p379_p1 = pnand %p377_p0, %p374_p13 }
 0x276   :  { %382 = shalt.err (!%p379_p1)
}
 0x277   :  { %271 = dma.vmem_to_hbm [thread:$0]  %s269_s17, 128, %s518_s6, [#allocation9]  }
 0x278   :  { %s421_s29 = smov [#allocation7]  }
 0x279   :  { %s258_s30 = sshll.u32 %s421_s29, 4  ;;  %s259_s30 = int_to_ptr.vmem [resolvable:$true] %s258_s30 }
 0x27a   :  { %s383_s7 = scalar_lea.vmem %s259_s30, 128  ;;  %p388_p3 = scmp.lt.s32.totalorder %s259_s30, %s259_s30 }
 0x27b   :  { %p384_p2 = scmp.ne.s32.totalorder %s259_s30, %s383_s7  ;;  %p389_p4 = scmp.lt.s32.totalorder %s383_s7, %s383_s7 }
 0x27d   :  { %p390_p5 = por %p389_p4, %p388_p3 }
 0x27f   :  { %p391_p6 = pnand %p390_p5, %p384_p2 }
 0x2df   :  { %v242_v38 = vpop.permute.xlu0 %241 }
 0x2e0   :  { %244 = vst.msk [vmem:[#allocation2] sm:$0xff] %vm43_vm1, %v242_v38  ;;  %250 = vst.msk [vmem:[#allocation7] sm:$0xff] %vm43_vm1, %v242_v38 }
 0x2e1   :  { %394 = shalt.err (!%p391_p6)
}
 0x2e2   :  { %s395_s10 = scalar_lea.hbm %s517_s5, 128 }
 0x2e3   :  { %p396_p7 = scmp.ne.s32.totalorder %s517_s5, %s395_s10  ;;  %p399_p8 = scmp.lt.u32.totalorder %s395_s10, %s517_s5 }
 0x2e5   :  { %p401_p9 = pnand %p399_p8, %p396_p7 }
 0x2e7   :  { %404 = shalt.err (!%p401_p9)
}
 0x2e8   :  { %261 = dma.vmem_to_hbm [thread:$0]  %s259_s30, 128, %s517_s5, [#allocation6]  }
 0x2e9   :  { %407 = dma.done.wait [#allocation6], 128  }
 0x2ea   :  { %408 = vsyncadd [#allocation6], 4294967168 }
 0x2eb   :  { %409 = dma.done.wait [#allocation9], 128  }
 0x2ec   :  { %410 = vsyncadd [#allocation9], 4294967168 }
 0x2ed   :  { %278 = vsyncpa [#allocation5], 1 }
 0x2ee   :  { %279 = vsyncpa [#allocation6], 1 }
 0x2ef   :  { %280 = vsyncpa [#allocation9], 1 }

</bundles_post_ra>
